<compile_context>
chip_gen: v6e
topology: v6e:2x2x1
jax: 0.10.0
libtpu: 0.0.40
codegen_flags: <defaults>
</compile_context>

<pallas_src>
import functools
import math

import jax
import jax.numpy as jnp
from jax.experimental import pallas as pl
from jax.experimental.pallas import tpu as pltpu

_LANE = 128


def _round_up(x, m):
    return (x + m - 1) // m * m


def _sublane(dtype):
    # Packed second-minor tile: 8 rows for 4-byte dtypes, 16 for bf16.
    return 8 * (4 // jnp.dtype(dtype).itemsize)


def init_decoder_params(key, input_dim, hidden_dim, c_dim, init_logvar=-3.0,
                        param_dtype=jnp.bfloat16):
    """nn.Linear-style init; packs all weights + biases into one padded slab."""
    hidden_dims = list(hidden_dim)[::-1]
    layer_sizes = list(hidden_dims) + [input_dim]
    layer_sizes[0] = hidden_dims[0] + c_dim
    z_dim = hidden_dims[0]

    in_dims = layer_sizes[:-1]
    out_dims = layer_sizes[1:]
    n_lin = len(in_dims)                                 # hidden layers + mean head
    out_pads = [_round_up(d, _LANE) for d in out_dims]
    slab_width = max(out_pads)
    sub = _sublane(param_dtype)
    zc_pad = _round_up(z_dim + c_dim, _LANE)
    # Padded input width each layer's weight block must cover.
    in_pads = [zc_pad] + out_pads[:-1]

    def linear(k, fan_in, fan_out):
        kw, kb = jax.random.split(k)
        bound = 1.0 / math.sqrt(fan_in)
        # Stored already transposed: (in, out).
        w = jax.random.uniform(kw, (fan_in, fan_out), jnp.float32, -bound, bound)
        b = jax.random.uniform(kb, (1, fan_out), jnp.float32, -bound, bound)
        return w, b

    keys = jax.random.split(key, n_lin)
    ref_ws, ref_bs = [], []
    layers, blocks = [], []
    row = 0

    for l in range(n_lin):
        fan_in, fan_out = in_dims[l], out_dims[l]
        w, b = linear(keys[l], fan_in, fan_out)
        ref_ws.append(w)
        ref_bs.append(b)
        # Weight block covers the full (lane-padded) input width of this layer,
        # so the fused concat([z, c]) of layer 0 is a single dense dot.
        in_pad = _round_up(in_pads[l], sub)
        blk = jnp.zeros((in_pad, slab_width), jnp.float32).at[:fan_in, :fan_out].set(w)
        blocks.append(blk)
        layers.append({"w": (row, in_pad), "out_pad": out_pads[l],
                       "relu": l < n_lin - 1})
        row += in_pad

    # All biases share ONE block: bias of layer l lives in row l.
    bias_rows = _round_up(n_lin, sub)
    bias_blk = jnp.zeros((bias_rows, slab_width), jnp.float32)
    for l in range(n_lin):
        bias_blk = bias_blk.at[l, :out_dims[l]].set(ref_bs[l][0])
    blocks.append(bias_blk)
    bias_row = row

    slab = jnp.concatenate(blocks, axis=0).astype(param_dtype)

    layout = {
        "z_dim": z_dim,
        "c_dim": c_dim,
        "zc_pad": zc_pad,
        "out_dim": input_dim,
        "out_pad": out_pads[-1],
        "bias_row": bias_row,
        "bias_rows": bias_rows,
        "layers": layers,
        "flops": 2 * sum(fi * fo for fi, fo in zip(in_dims, out_dims)),
    }
    logvar = jnp.full((1, input_dim), init_logvar, jnp.float32)
    return {"slab": slab, "layout": layout, "logvar": logvar,
            "ref_ws": ref_ws, "ref_bs": ref_bs,
            "z_dim": z_dim, "c_dim": c_dim}


def _decoder_kernel(layout, non_linear, compute_dtype, zc_ref, p_ref, out_ref):
    """Fused decoder MLP + mean head; one param slab, one lane-dense mu output."""
    b0, b_rows = layout["bias_row"], layout["bias_rows"]
    # One aligned load of the shared bias block; per-layer rows are value slices.
    biases = p_ref[b0:b0 + b_rows, :].astype(jnp.float32)

    h = zc_ref[...]                                         # (bt, 128) in compute dtype
    for li, ent in enumerate(layout["layers"]):
        w0, nrows = ent["w"]
        cols = ent["out_pad"]
        acc = jnp.dot(h.astype(compute_dtype), p_ref[w0:w0 + nrows, :cols],
                      preferred_element_type=jnp.float32)   # MXU, f32 accumulation
        h = acc + biases[li:li + 1, :cols]
        if non_linear and ent["relu"]:
            h = jnp.maximum(h, 0.0)

    out_ref[...] = jnp.clip(h, -1.0e6, 1.0e6)


def decoder_forward(z, c, params, non_linear=False, batch_tile=256):
    """Returns (loc, scale) of the Normal produced by Decoder.forward(z, c)."""
    layout = params["layout"]
    slab = params["slab"]
    dtype = slab.dtype
    sub = _sublane(dtype)

    c = c.reshape(-1, layout["c_dim"]).astype(jnp.float32)
    z = z.astype(jnp.float32)
    zc = jnp.concatenate([z, c], axis=1)            # torch.cat fused in the wrapper
    B, zc_w = zc.shape
    zc_pad = layout["zc_pad"]
    out_pad = layout["out_pad"]
    out_dim = layout["out_dim"]

    # Batch tiling: lane-pad zc to 128 and row-pad the batch to the tile size.
    bt = min(int(batch_tile), _round_up(B, sub))
    B_pad = _round_up(B, bt)
    zc_p = jnp.zeros((B_pad, zc_pad), dtype).at[:B, :zc_w].set(zc.astype(dtype))
    grid = (B_pad // bt,)

    kernel = functools.partial(_decoder_kernel, layout, non_linear, dtype)

    bytes_accessed = (zc_p.size * zc_p.dtype.itemsize
                      + slab.size * slab.dtype.itemsize
                      + B_pad * out_pad * 4)
    cost = pl.CostEstimate(flops=B_pad * layout["flops"], transcendentals=0,
                           bytes_accessed=bytes_accessed)

    mu_pad = pl.pallas_call(
        kernel,
        out_shape=jax.ShapeDtypeStruct((B_pad, out_pad), jnp.float32),
        grid_spec=pltpu.PrefetchScalarGridSpec(
            num_scalar_prefetch=0,
            grid=grid,
            in_specs=[
                pl.BlockSpec((bt, zc_pad), lambda i: (i, 0)),
                # Constant block index: slab DMA'd once, VMEM-resident across tiles.
                pl.BlockSpec(slab.shape, lambda i: (0, 0)),
            ],
            out_specs=pl.BlockSpec((bt, out_pad), lambda i: (i, 0)),
        ),
        compiler_params=pltpu.CompilerParams(
            dimension_semantics=("parallel",)),
        cost_estimate=cost,
    )(zc_p, slab)

    mu = mu_pad[:B, :out_dim]

    # Input-independent scale path hoisted out of the kernel (per review).
    logvar = jnp.clip(params["logvar"], -10.0, 10.0)
    scale = jnp.exp(0.5 * logvar) + 1.0e-6
    scale = jnp.broadcast_to(scale, mu.shape)
    # TODO(synk): torch.distributions.Normal has no Pallas equivalent; return
    # the (loc, scale) arrays that parameterize it.
    return mu, scale


def decoder_forward_ref(z, c, params, non_linear=False):
    """Pure-JAX reference (mirrors the kernel's bf16-weight / f32-accumulate)."""
    dtype = params["slab"].dtype
    c = c.reshape(-1, params["c_dim"]).astype(jnp.float32)
    h = jnp.concatenate([z.astype(jnp.float32), c], axis=1)
    ws, bs = params["ref_ws"], params["ref_bs"]
    n = len(ws)
    for i, (w, b) in enumerate(zip(ws, bs)):
        h = jnp.dot(h.astype(dtype), w.astype(dtype),
                    preferred_element_type=jnp.float32)
        h = h + b.astype(dtype).astype(jnp.float32)
        if non_linear and i < n - 1:
            h = jnp.maximum(h, 0.0)
    mu = jnp.clip(h, -1.0e6, 1.0e6)
    logvar = jnp.clip(params["logvar"], -10.0, 10.0)
    scale = jnp.exp(0.5 * logvar) + 1.0e-6
    return mu, jnp.broadcast_to(scale, mu.shape)


if __name__ == "__main__":
    # Small config consistent with the module: input_dim=16, hidden_dim=[32, 8],
    # c_dim=4 -> decoder path: cat(z(8), c(4)) -> 32 -> 16.
    input_dim, hidden_dim, c_dim = 16, [32, 8], 4
    non_linear = True
    init_logvar = -3.0
    batch = 8

    key = jax.random.PRNGKey(0)
    k_params, k_z, k_c = jax.random.split(key, 3)

    params = init_decoder_params(k_params, input_dim, hidden_dim, c_dim,
                                 init_logvar=init_logvar)
    z = jax.random.normal(k_z, (batch, params["z_dim"]), jnp.float32)
    c = jax.random.normal(k_c, (batch, c_dim), jnp.float32)

    mu, scale = decoder_forward(z, c, params, non_linear=non_linear)
    jax.block_until_ready((mu, scale))

    mu_ref, scale_ref = decoder_forward_ref(z, c, params, non_linear=non_linear)
    assert mu.shape == (batch, input_dim), mu.shape
    assert scale.shape == (batch, input_dim), scale.shape
    assert jnp.allclose(mu, mu_ref, atol=1e-4, rtol=1e-4), \
        float(jnp.max(jnp.abs(mu - mu_ref)))
    assert jnp.allclose(scale, scale_ref, atol=1e-6, rtol=1e-6)

    print("KERNEL_OK")
</pallas_src>

<mosaic_0001>
module attributes {stable_mosaic.version = 11 : i64} {
  func.func @_decoder_kernel(%arg0: i32, %arg1: memref<16x128xbf16, #tpu.memory_space<vmem>>, %arg2: memref<272x128xbf16, #tpu.memory_space<vmem>>, %arg3: memref<16x128xf32, #tpu.memory_space<vmem>>) attributes {dimension_semantics = [#tpu.dimension_semantics<parallel>], iteration_bounds = array<i64: 1>, scalar_prefetch = 0 : i64, scratch_operands = 0 : i64, tpu.core_type = #tpu.core_type<tc>, window_params = [{transform_indices = @transform_0, window_bounds = array<i64: 16, 128>}, {pipeline_mode = #tpu.pipeline_mode<synchronous>, transform_indices = @transform_1, window_bounds = array<i64: 272, 128>}, {transform_indices = @transform_2, window_bounds = array<i64: 16, 128>}]} {
    %c256 = arith.constant 256 : index
    %c0 = arith.constant 0 : index
    %0 = vector.load %arg2[%c256, %c0] : memref<272x128xbf16, #tpu.memory_space<vmem>>, vector<16x128xbf16>
    %1 = arith.extf %0 : vector<16x128xbf16> to vector<16x128xf32>
    %c0_0 = arith.constant 0 : index
    %c0_1 = arith.constant 0 : index
    %2 = vector.load %arg1[%c0_0, %c0_1] : memref<16x128xbf16, #tpu.memory_space<vmem>>, vector<16x128xbf16>
    %c0_2 = arith.constant 0 : index
    %c0_3 = arith.constant 0 : index
    %3 = vector.load %arg2[%c0_2, %c0_3] : memref<272x128xbf16, #tpu.memory_space<vmem>>, vector<128x128xbf16>
    %cst = arith.constant dense<0.000000e+00> : vector<16x128xf32>
    %4 = tpu.matmul %2, %3, %cst {dimension_numbers = #tpu.dot_dimension_numbers<[1], [0], [0], [1], [0, 0, 1, 1], [], []>} : vector<16x128xbf16>, vector<128x128xbf16>, vector<16x128xf32> -> vector<16x128xf32>
    %5 = vector.extract_strided_slice %1 {offsets = [0, 0], sizes = [1, 128], strides = [1, 1]} : vector<16x128xf32> to vector<1x128xf32>
    %6 = vector.broadcast %5 : vector<1x128xf32> to vector<16x128xf32>
    %7 = arith.addf %4, %6 : vector<16x128xf32>
    %cst_4 = arith.constant 0.000000e+00 : f32
    %8 = vector.broadcast %cst_4 : f32 to vector<16x128xf32>
    %9 = arith.maximumf %7, %8 : vector<16x128xf32>
    %10 = arith.truncf %9 : vector<16x128xf32> to vector<16x128xbf16>
    %c128 = arith.constant 128 : index
    %c0_5 = arith.constant 0 : index
    %11 = vector.load %arg2[%c128, %c0_5] : memref<272x128xbf16, #tpu.memory_space<vmem>>, vector<128x128xbf16>
    %cst_6 = arith.constant dense<0.000000e+00> : vector<16x128xf32>
    %12 = tpu.matmul %10, %11, %cst_6 {dimension_numbers = #tpu.dot_dimension_numbers<[1], [0], [0], [1], [0, 0, 1, 1], [], []>} : vector<16x128xbf16>, vector<128x128xbf16>, vector<16x128xf32> -> vector<16x128xf32>
    %13 = vector.extract_strided_slice %1 {offsets = [1, 0], sizes = [1, 128], strides = [1, 1]} : vector<16x128xf32> to vector<1x128xf32>
    %14 = vector.broadcast %13 : vector<1x128xf32> to vector<16x128xf32>
    %15 = arith.addf %12, %14 : vector<16x128xf32>
    %cst_7 = arith.constant -1.000000e+06 : f32
    %cst_8 = arith.constant 1.000000e+06 : f32
    %16 = vector.broadcast %cst_7 : f32 to vector<16x128xf32>
    %17 = arith.maximumf %16, %15 : vector<16x128xf32>
    %18 = vector.broadcast %cst_8 : f32 to vector<16x128xf32>
    %19 = arith.minimumf %18, %17 : vector<16x128xf32>
    %c0_9 = arith.constant 0 : index
    %c0_10 = arith.constant 0 : index
    %20 = vector.load %arg3[%c0_9, %c0_10] : memref<16x128xf32, #tpu.memory_space<vmem>>, vector<16x128xf32>
    tpu.vector_store %arg3[%c0_9, %c0_10], %19 {strides = array<i32>} : memref<16x128xf32, #tpu.memory_space<vmem>>, vector<16x128xf32>,
    return
  }
  func.func @transform_0(%arg0: i32) -> (i32, i32) {
    %c0_i32 = arith.constant 0 : i32
    %c0_i32_0 = arith.constant 0 : i32
    return %arg0, %c0_i32 : i32, i32
  }
  func.func @transform_1(%arg0: i32) -> (i32, i32) {
    %c0_i32 = arith.constant 0 : i32
    %c0_i32_0 = arith.constant 0 : i32
    %c0_i32_1 = arith.constant 0 : i32
    return %c0_i32, %c0_i32_0 : i32, i32
  }
  func.func @transform_2(%arg0: i32) -> (i32, i32) {
    %c0_i32 = arith.constant 0 : i32
    %c0_i32_0 = arith.constant 0 : i32
    return %arg0, %c0_i32 : i32, i32
  }
}

</mosaic_0001>

<bundles_post_ra>
// kernel: tpu_custom_call.1
= control target key start
LH: loop header
LB: loop body
LE: loop exit
PB: predicated region body
PF: predicated region fallthrough
CT: control target
= control target key end

     0   :  { %7 = vsyncpa [#allocation3], 0  ;;  %s498_s0 = inlined_call_operand.hbm [shape: bf16[16,128], index: 0, kind: input, shape index: {}]   ;;  %s499_s1 = inlined_call_operand.hbm [shape: bf16[272,128], index: 1, kind: input, shape index: {}]   ;;  %s500_s2 = inlined_call_operand.hbm [shape: f32[16,128], index: 2, kind: output, shape index: {}]  }
   0x1   :  { %8 = vsyncpa [#allocation6], 0 }
   0x2   :  { %9 = vsyncpa [#allocation4], 0  ;;  %s465_s9 = smov [#allocation2]  }
   0x3   :  { %s15_s10 = sshll.u32 %s465_s9, 4  ;;  %s16_s10 = int_to_ptr.vmem [resolvable:$true] %s15_s10 }
   0x4   :  { %s407_s11 = scalar_lea.vmem %s16_s10, 128  ;;  %p412_p1 = scmp.lt.s32.totalorder %s16_s10, %s16_s10 }
   0x5   :  { %p408_p0 = scmp.ne.s32.totalorder %s16_s10, %s407_s11  ;;  %p413_p2 = scmp.lt.s32.totalorder %s407_s11, %s407_s11 }
   0x7   :  { %p414_p3 = por %p413_p2, %p412_p1 }
   0x9   :  { %p415_p4 = pnand %p414_p3, %p408_p0 }
   0xb   :  { %418 = shalt.err (!%p415_p4)
}
   0xc   :  { %s466_s12 = smov 64   ;;  %s467_s13 = smov 4  }
   0xd   :  { %21 = dma.hbm_to_vmem [thread:$0]  %s498_s0, 128, %s16_s10, [#allocation3], %s466_s12, %s466_s12, %s467_s13  }
   0xe   :  { %s468_s16 = smov [#allocation5]  }
   0xf   :  { %s27_s17 = sshll.u32 %s468_s16, 4  ;;  %s28_s17 = int_to_ptr.vmem [resolvable:$true] %s27_s17 }
  0x10   :  { %s427_s18 = scalar_lea.vmem %s28_s17, 2176  ;;  %p432_p6 = scmp.lt.s32.totalorder %s28_s17, %s28_s17 }
  0x11   :  { %p428_p5 = scmp.ne.s32.totalorder %s28_s17, %s427_s18  ;;  %p433_p7 = scmp.lt.s32.totalorder %s427_s18, %s427_s18 }
  0x13   :  { %p434_p8 = por %p433_p7, %p432_p6 }
  0x15   :  { %p435_p9 = pnand %p434_p8, %p428_p5 }
  0x17   :  { %438 = shalt.err (!%p435_p9)
}
  0x18   :  { %33 = dma.hbm_to_vmem [thread:$0]  %s499_s1, 2176, %s28_s17, [#allocation6], %s466_s12, %s466_s12, %s467_s13  }
  0x19   :  { %459 = dma.done.wait [#allocation3], 128  }
  0x1a   :  { %460 = vsyncadd [#allocation3], 4294967168 }
  0x1b   :  { %461 = dma.done.wait [#allocation6], 2176  }
  0x1c   :  { %462 = vsyncadd [#allocation6], 4294965120  ;;  %v469_v0 = vmov 0.0   ;;  %vm470_vm0 = vmmov 0   ;;  %v382_v1 = vld [vmem:[#allocation5 + $0x38] sm:$0xff]   ;;  %v383_v2 = vld [vmem:[#allocation5 + $0x30] sm:$0xff]   ;;  %v61_v18 = vlaneseq }
  0x1d   :  { %333 = vmatprep.subr.bf16.mxu0 %v469_v0  ;;  %349 = vmatprep.mubr.msk.bf16.mxu0 %vm470_vm0, %v469_v0  ;;  %v384_v3 = vld [vmem:[#allocation5 + $0x28] sm:$0xff]   ;;  %v391_v4 = vld [vmem:[#allocation5 + $0x78] sm:$0xff]   ;;  %v385_v5 = vld [vmem:[#allocation5 + $0x20] sm:$0xff]   ;;  %s471_s0 = smov [#allocation7]  }
  0x1e   :  { %353 = vmatprep.subr.bf16.mxu1 %v469_v0  ;;  %369 = vmatprep.mubr.msk.bf16.mxu1 %vm470_vm0, %v469_v0  ;;  %v392_v6 = vld [vmem:[#allocation5 + $0x70] sm:$0xff]   ;;  %v386_v7 = vld [vmem:[#allocation5 + $0x18] sm:$0xff]   ;;  %v393_v8 = vld [vmem:[#allocation5 + $0x68] sm:$0xff]   ;;  %v62_v19 = vshrl.u32 %v61_v18, 7  ;;  %s283_s1 = sshll.u32 %s471_s0, 4  ;;  %s284_s1 = int_to_ptr.vmem [resolvable:$true] %s283_s1 }
  0x1f   :  { %334 = vmatpush3.bf16.msra.mxu0 %v382_v1  ;;  %354 = vmatpush3.bf16.msra.mxu1 %v391_v4  ;;  %v387_v9 = vld [vmem:[#allocation5 + $0x10] sm:$0xff]   ;;  %v394_v10 = vld [vmem:[#allocation5 + $0x60] sm:$0xff]   ;;  %v388_v11 = vld [vmem:[#allocation5 + $0x8] sm:$0xff]   ;;  %s439_s21 = scalar_lea.vmem %s284_s1, 256  ;;  %p444_p11 = scmp.lt.s32.totalorder %s284_s1, %s284_s1 }
  0x20   :  { %335 = vmatprep.subr.bf16.mxu0 %v469_v0  ;;  %355 = vmatprep.subr.bf16.mxu1 %v469_v0  ;;  %v395_v12 = vld [vmem:[#allocation5 + $0x58] sm:$0xff]   ;;  %v389_v13 = vld [vmem:[#allocation5] sm:$0xff]   ;;  %v396_v15 = vld [vmem:[#allocation5 + $0x50] sm:$0xff]   ;;  %v63_v22 = vsub.s32 0, %v62_v19  ;;  %v181_v33 = vsub.s32 1, %v62_v19  ;;  %p440_p10 = scmp.ne.s32.totalorder %s284_s1, %s439_s21  ;;  %p445_p12 = scmp.lt.s32.totalorder %s439_s21, %s439_s21 }
  0x21   :  { %v390_v14 = vld [vmem:[#allocation2] sm:$0xff]   ;;  %v397_v16 = vld [vmem:[#allocation5 + $0x48] sm:$0xff]   ;;  %v398_v17 = vld [vmem:[#allocation5 + $0x40] sm:$0xff]  }
  0x22   :  { %v41_v20 = vld [vmem:[#allocation5 + $0x80] sm:$0xf]  ;;  %p446_p13 = por %p445_p12, %p444_p11 }
  0x23   :  { %336 = vmatpush3.bf16.msra.mxu0 %v383_v2  ;;  %356 = vmatpush3.bf16.msra.mxu1 %v392_v6  ;;  %v42_v21 = vunpack.c.l.bf16 %v41_v20 }
  0x24   :  { %337 = vmatprep.subr.bf16.mxu0 %v469_v0  ;;  %357 = vmatprep.subr.bf16.mxu1 %v469_v0  ;;  %p447_p0 = pnand %p446_p13, %p440_p10 }
  0x25   :  { %v64_v23 = vrot.slane %v42_v21, %v63_v22  ;;  %v182_v34 = vrot.slane %v42_v21, %v181_v33 }
  0x27   :  { %338 = vmatpush3.bf16.msra.mxu0 %v384_v3  ;;  %358 = vmatpush3.bf16.msra.mxu1 %v393_v8 }
  0x28   :  { %339 = vmatprep.subr.bf16.mxu0 %v469_v0  ;;  %359 = vmatprep.subr.bf16.mxu1 %v469_v0 }
  0x2b   :  { %340 = vmatpush3.bf16.msra.mxu0 %v385_v5  ;;  %360 = vmatpush3.bf16.msra.mxu1 %v394_v10 }
  0x2c   :  { %341 = vmatprep.subr.bf16.mxu0 %v469_v0  ;;  %361 = vmatprep.subr.bf16.mxu1 %v469_v0 }
  0x2f   :  { %342 = vmatpush3.bf16.msra.mxu0 %v386_v7  ;;  %362 = vmatpush3.bf16.msra.mxu1 %v395_v12 }
  0x30   :  { %343 = vmatprep.subr.bf16.mxu0 %v469_v0  ;;  %363 = vmatprep.subr.bf16.mxu1 %v469_v0 }
  0x33   :  { %344 = vmatpush3.bf16.msra.mxu0 %v387_v9  ;;  %364 = vmatpush3.bf16.msra.mxu1 %v396_v15 }
  0x34   :  { %345 = vmatprep.subr.bf16.mxu0 %v469_v0  ;;  %365 = vmatprep.subr.bf16.mxu1 %v469_v0 }
  0x37   :  { %346 = vmatpush3.bf16.msra.mxu0 %v388_v11  ;;  %366 = vmatpush3.bf16.msra.mxu1 %v397_v16 }
  0x38   :  { %347 = vmatprep.subr.bf16.mxu0 %v469_v0  ;;  %367 = vmatprep.subr.bf16.mxu1 %v469_v0 }
  0x3b   :  { %348 = vmatpush3.bf16.msra.mxu0 %v389_v13  ;;  %368 = vmatpush3.bf16.msra.mxu1 %v398_v17 }
  0x3e   :  { %350 = vmatmul.mubr.bf16.vlgmr.msra.gmra.mxu0 %v390_v14 }
  0xfe   :  { %v153_v24 = vpop.f32.mrf.mxu0 }
  0xff   :  { %v154_v26 = vadd.f32 %v153_v24, %v64_v23 }
 0x100   :  { %v351_v25 = vpop.f32.mrf.mxu0 }
 0x101   :  { %v160_v30 = vmax.f32 %v154_v26, 0.0 }
 0x102   :  { %v156_v27 = vpop.f32.mrf.mxu0 }
 0x103   :  { %v157_v28 = vadd.f32 %v156_v27, %v64_v23 }
 0x104   :  { %v352_v29 = vpop.f32.mrf.mxu0 }
 0x105   :  { %v161_v31 = vmax.f32 %v157_v28, 0.0 }
 0x107   :  { %v162_v32 = vpack.c.bf16 %v161_v31, %v160_v30 }
 0x109   :  { %370 = vmatmul.mubr.bf16.vlgmr.msra.gmra.mxu1 %v162_v32 }
 0x1c9   :  { %v265_v35 = vpop.f32.mrf.mxu1 }
 0x1ca   :  { %v266_v36 = vadd.f32 %v265_v35, %v182_v34 }
 0x1cb   :  { %v371_v37 = vpop.f32.mrf.mxu1 }
 0x1cc   :  { %v313_v38 = vclamps-f32 %v266_v36, 1000000.0 }
 0x1cd   :  { %v268_v39 = vpop.f32.mrf.mxu1 }
 0x1ce   :  { %276 = vst [vmem:[#allocation7] sm:$0xff] %v313_v38  ;;  %v269_v40 = vadd.f32 %v268_v39, %v182_v34 }
 0x1cf   :  { %v372_v41 = vpop.f32.mrf.mxu1 }
 0x1d0   :  { %v314_v42 = vclamps-f32 %v269_v40, 1000000.0 }
 0x1d2   :  { %277 = vst [vmem:[#allocation7 + $0x8] sm:$0xff] %v314_v42 }
 0x1d3   :  { %450 = shalt.err (!%p447_p0)
}
 0x1d4   :  { %s472_s22 = smov 128   ;;  %s473_s23 = smov 8  }
 0x1d5   :  { %289 = dma.vmem_to_hbm [thread:$0]  %s284_s1, 256, %s500_s2, [#allocation4], %s472_s22, %s472_s22, %s473_s23  }
 0x1d6   :  { %463 = dma.done.wait [#allocation4], 256  }
 0x1d7   :  { %464 = vsyncadd [#allocation4], 4294967040 }
 0x1d8   :  { %293 = vsyncpa [#allocation3], 1 }
 0x1d9   :  { %294 = vsyncpa [#allocation6], 1 }
 0x1da   :  { %295 = vsyncpa [#allocation4], 1 }

</bundles_post_ra>
